<compile_context>
chip_gen: v5e
topology: v5e:2x2
jax: 0.10.0
libtpu: 0.0.40
codegen_flags: <defaults>
</compile_context>

<pallas_src>
import functools

import jax
import jax.numpy as jnp
from jax import lax
from jax.experimental import pallas as pl
from jax.experimental.pallas import tpu as pltpu

LN_EPS = 1e-5   # torch.nn.LayerNorm default
_K_PAD = 8      # Linear(3->D) contraction dim padded 3 -> 8 (sublane multiple, MXU-friendly)


def _round_up(a, b):
    return (a + b - 1) // b * b


def _vmem_capacity_bytes():
    """Physical VMEM of the attached TPU (trace-time query); conservative fallback."""
    try:
        info = pltpu.get_tpu_info()
        cap = int(getattr(info, "vmem_capacity_bytes", 0) or 0)
        if cap > 0:
            return cap
    except Exception:
        pass
    return 64 << 20  # assume the smallest current part (v7x per-core VMEM)


def _prompt_encoder_kernel(x_ref, w1_ref, b1_ref, g_ref, beta_ref, w2_ref, b2_ref, o_ref):
    """One (tm, tn) output tile of Linear(3->D) -> LayerNorm(D) -> ReLU -> Linear(D->D)[:, cols]."""
    x = x_ref[...]                                 # (tm, 8), f32, K zero-padded 3 -> 8
    w1 = w1_ref[...].astype(jnp.float32)           # (8, D)

    # Linear(3 -> D): K padded to 8 and run on the MXU (nearly idle in this
    # memory-bound kernel), which keeps the VPU free for the LayerNorm epilogue.
    h = jnp.dot(x, w1, preferred_element_type=jnp.float32)
    h = h + b1_ref[...].astype(jnp.float32)        # (tm, D)

    # LayerNorm over the feature axis: two-pass (centered) variance — matches
    # torch.nn.LayerNorm numerics; rsqrt lowers to the EUP slot (free).
    mu = jnp.mean(h, axis=-1, keepdims=True)
    hc = h - mu
    var = jnp.mean(hc * hc, axis=-1, keepdims=True)
    scale = g_ref[...].astype(jnp.float32) * lax.rsqrt(var + LN_EPS)
    hn = hc * scale + beta_ref[...].astype(jnp.float32)

    # ReLU
    hr = jnp.maximum(hn, 0.0)

    # Linear(D -> D), only the tn output columns owned by this grid step.
    w2 = w2_ref[...]                               # (D, tn), bf16 by default
    out = jnp.dot(hr.astype(w2.dtype), w2, preferred_element_type=jnp.float32)
    out = out + b2_ref[...].astype(jnp.float32)
    o_ref[...] = out.astype(o_ref.dtype)


@functools.partial(jax.jit, static_argnames=("tm", "tn", "weight_dtype"))
def prompt_encoder_forward(clicks, params, *, tm=256, tn=None, weight_dtype=jnp.bfloat16):
    """clicks: (B, N, 3) -> (B, N, D).  weight_dtype: storage dtype for the streamed W2."""
    w1, b1, gamma, beta, w2, b2 = (
        params["w1"], params["b1"], params["gamma"], params["beta"], params["w2"], params["b2"]
    )
    B, N, dim = clicks.shape
    D = w1.shape[1]
    assert dim <= _K_PAD, "PromptEncoder expects 3-D click coordinates"
    assert D % 128 == 0, "latent_dim must be a multiple of 128 (TPU lane width)"

    # bf16 by default for the large streamed W2 (halves HBM traffic + W2 VMEM buffers);
    # the kernel accumulates in f32 regardless.
    w2c = w2 if weight_dtype is None else w2.astype(weight_dtype)
    wbytes = jnp.dtype(w2c.dtype).itemsize

    # --- Row (M) tiling: MXU-aligned tiles once M matters, minimal padding when small.
    M = B * N
    tm_eff = min(tm, _round_up(M, 8))
    if tm_eff >= 256:
        tm_eff = _round_up(tm_eff, 256)
    elif tm_eff >= 128:
        tm_eff = _round_up(tm_eff, 128)
    else:
        tm_eff = _round_up(tm_eff, 8)
    M_pad = _round_up(M, tm_eff)

    # --- Generation-aware column tile + VMEM budget. ---
    cap = _vmem_capacity_bytes()
    vmem_ceiling = max(int(cap * 0.75), 32 << 20)        # ~75% of physical VMEM
    big_vmem = cap >= (96 << 20)                          # v5e/v6e (128 MiB) vs v7x (64 MiB)
    tn_hw_cap = 2048 if big_vmem else 1024
    min_col_tiles = 2 if big_vmem else 4                  # v7x: >=2 column steps per core after megacore split
    tn_cap = max(128, min(tn if tn is not None else tn_hw_cap, tn_hw_cap, D))

    def budget(tn_c):
        return (
            2 * tm_eff * 128 * 4            # x tiles (lane-padded), double-buffered
            + _K_PAD * D * 4                # resident W1 (K padded to 8)
            + 3 * 8 * D * 4                 # b1 / gamma / beta (sublane-padded)
            + 2 * D * tn_c * wbytes         # W2 column blocks (streamed, double-buffered)
            + 2 * 8 * tn_c * 4              # b2 blocks
            + 2 * tm_eff * tn_c * 4         # output tiles
            + 3 * tm_eff * D * 4            # h / hn / hr f32 elementwise temporaries
            + tm_eff * D * wbytes           # hr cast to the matmul input dtype
        )

    candidates = [c for c in range(tn_cap - tn_cap % 128, 127, -128) if D % c == 0]
    tn_eff = None
    for c in candidates:                    # largest column block that fits + keeps enough tiles
        if D // c >= min_col_tiles and budget(c) <= vmem_ceiling:
            tn_eff = c
            break
    if tn_eff is None:                      # small D: relax the min-tile-count requirement
        for c in candidates:
            if budget(c) <= vmem_ceiling:
                tn_eff = c
                break
    if tn_eff is None:
        tn_eff = 128
    vmem_limit = min(max(int(1.25 * budget(tn_eff)) + (2 << 20), 32 << 20), vmem_ceiling)

    # --- Operands. ---
    x = clicks.reshape(M, dim).astype(jnp.float32)
    x = jnp.pad(x, ((0, M_pad - M), (0, _K_PAD - dim)))            # zero-pad rows + K dim
    w1p = jnp.pad(w1.astype(jnp.float32), ((0, _K_PAD - dim), (0, 0)))
    # Keep 1-row operands 2-D so the feature axis stays on the lane dimension.
    b1_2d, g_2d, beta_2d, b2_2d = b1[None, :], gamma[None, :], beta[None, :], b2[None, :]

    J, I = D // tn_eff, M_pad // tm_eff
    cost = pl.CostEstimate(
        flops=2 * M_pad * D * D + J * M_pad * D * (2 * _K_PAD + 9),   # main matmul + recomputed prologue
        transcendentals=M_pad * J,                                    # one rsqrt per row per column tile
        bytes_accessed=(J * M_pad * _K_PAD * 4                        # x re-read per column tile
                        + D * D * wbytes                              # W2 read exactly once
                        + (1 + _K_PAD) * D * 4 + 3 * D * 4            # W1 + biases / affine
                        + M_pad * D * jnp.dtype(clicks.dtype).itemsize),
    )

    out = pl.pallas_call(
        _prompt_encoder_kernel,
        out_shape=jax.ShapeDtypeStruct((M_pad, D), clicks.dtype),
        grid_spec=pltpu.PrefetchScalarGridSpec(
            num_scalar_prefetch=0,
            grid=(J, I),                                             # (output-column tiles, M tiles)
            in_specs=[
                pl.BlockSpec((tm_eff, _K_PAD), lambda j, i: (i, 0)),  # x tile
                pl.BlockSpec((_K_PAD, D), lambda j, i: (0, 0)),       # W1 (small, stays resident)
                pl.BlockSpec((1, D), lambda j, i: (0, 0)),            # b1
                pl.BlockSpec((1, D), lambda j, i: (0, 0)),            # LN gamma
                pl.BlockSpec((1, D), lambda j, i: (0, 0)),            # LN beta
                pl.BlockSpec((D, tn_eff), lambda j, i: (0, j)),       # W2 column block (streamed)
                pl.BlockSpec((1, tn_eff), lambda j, i: (0, j)),       # b2 column block
            ],
            out_specs=pl.BlockSpec((tm_eff, tn_eff), lambda j, i: (i, j)),
        ),
        compiler_params=pltpu.CompilerParams(
            # Column axis "parallel": on v7x the 2-TC split lands on j, so W2 is still
            # read exactly once per chip.  Neutral on single-TC v5e/v6e.
            dimension_semantics=("parallel", "arbitrary"),
            vmem_limit_bytes=vmem_limit,
        ),
        cost_estimate=cost,
    )(x, w1p, b1_2d, g_2d, beta_2d, w2c, b2_2d)

    return out[:M].reshape(B, N, D)


def init_params(key, dim=3, latent_dim=128, dtype=jnp.float32):
    """Deterministic synthetic init matching the shapes of PositionEmbeddingLearnedMLP."""
    k1, k2, k3, k4 = jax.random.split(key, 4)
    scale1 = 1.0 / jnp.sqrt(dim)
    scale2 = 1.0 / jnp.sqrt(latent_dim)
    return {
        "w1": jax.random.uniform(k1, (dim, latent_dim), dtype, -scale1, scale1),
        "b1": jax.random.uniform(k2, (latent_dim,), dtype, -scale1, scale1),
        "gamma": jnp.ones((latent_dim,), dtype),
        "beta": jnp.zeros((latent_dim,), dtype),
        "w2": jax.random.uniform(k3, (latent_dim, latent_dim), dtype, -scale2, scale2),
        "b2": jax.random.uniform(k4, (latent_dim,), dtype, -scale2, scale2),
    }


def _reference_forward(clicks, params):
    """Pure-JAX reference of Linear -> LayerNorm -> ReLU -> Linear."""
    h = clicks @ params["w1"] + params["b1"]
    mu = h.mean(-1, keepdims=True)
    var = ((h - mu) ** 2).mean(-1, keepdims=True)
    hn = (h - mu) / jnp.sqrt(var + LN_EPS) * params["gamma"] + params["beta"]
    hr = jnp.maximum(hn, 0.0)
    return hr @ params["w2"] + params["b2"]


if __name__ == "__main__":
    key = jax.random.PRNGKey(0)
    k_param, k_clicks, k_clicks2 = jax.random.split(key, 3)

    # Small stand-in for latent_dim=4096 (the kernel tiles D, so it scales unchanged).
    B, N, dim, latent_dim = 2, 80, 3, 256
    params = init_params(k_param, dim=dim, latent_dim=latent_dim)
    clicks = jax.random.normal(k_clicks, (B, N, dim), jnp.float32)

    # f32 weights, small explicit tiles -> exercises both grid axes and M padding.
    out = jax.block_until_ready(
        prompt_encoder_forward(clicks, params, tm=64, tn=128, weight_dtype=jnp.float32))
    ref = _reference_forward(clicks, params)
    assert out.shape == (B, N, latent_dim)
    assert jnp.allclose(out, ref, atol=1e-4, rtol=1e-4), "f32 mismatch vs pure-JAX reference"

    # Ragged click count (B*N not a multiple of any tile), auto tiles, f32 weights.
    clicks2 = jax.random.normal(k_clicks2, (1, 5, dim), jnp.float32)
    out2 = jax.block_until_ready(
        prompt_encoder_forward(clicks2, params, weight_dtype=jnp.float32))
    ref2 = _reference_forward(clicks2, params)
    assert jnp.allclose(out2, ref2, atol=1e-4, rtol=1e-4), "ragged-M mismatch vs reference"

    # Default path: bf16 storage for the streamed W2 (f32 accumulation inside the kernel).
    out_bf = jax.block_until_ready(prompt_encoder_forward(clicks, params))
    params_bf_ref = dict(params, w2=params["w2"].astype(jnp.bfloat16).astype(jnp.float32))
    ref_bf = _reference_forward(clicks, params_bf_ref)
    assert jnp.allclose(out_bf, ref_bf, atol=2e-2, rtol=2e-2), "bf16-W2 mismatch vs reference"

    print("KERNEL_OK")
</pallas_src>

<mosaic_0001>
module attributes {stable_mosaic.version = 11 : i64} {
  func.func @_prompt_encoder_kernel(%arg0: i32, %arg1: i32, %arg2: memref<64x8xf32, #tpu.memory_space<vmem>>, %arg3: memref<8x256xf32, #tpu.memory_space<vmem>>, %arg4: memref<1x256xf32, #tpu.memory_space<vmem>>, %arg5: memref<1x256xf32, #tpu.memory_space<vmem>>, %arg6: memref<1x256xf32, #tpu.memory_space<vmem>>, %arg7: memref<256x128xf32, #tpu.memory_space<vmem>>, %arg8: memref<1x128xf32, #tpu.memory_space<vmem>>, %arg9: memref<64x128xf32, #tpu.memory_space<vmem>>) attributes {dimension_semantics = [#tpu.dimension_semantics<parallel>, #tpu.dimension_semantics<arbitrary>], iteration_bounds = array<i64: 2, 3>, scalar_prefetch = 0 : i64, scratch_operands = 0 : i64, tpu.core_type = #tpu.core_type<tc>, window_params = [{transform_indices = @transform_0, window_bounds = array<i64: 64, 8>}, {pipeline_mode = #tpu.pipeline_mode<synchronous>, transform_indices = @transform_1, window_bounds = array<i64: 8, 256>}, {pipeline_mode = #tpu.pipeline_mode<synchronous>, transform_indices = @transform_2, window_bounds = array<i64: 1, 256>}, {pipeline_mode = #tpu.pipeline_mode<synchronous>, transform_indices = @transform_3, window_bounds = array<i64: 1, 256>}, {pipeline_mode = #tpu.pipeline_mode<synchronous>, transform_indices = @transform_4, window_bounds = array<i64: 1, 256>}, {transform_indices = @transform_5, window_bounds = array<i64: 256, 128>}, {transform_indices = @transform_6, window_bounds = array<i64: 1, 128>}, {transform_indices = @transform_7, window_bounds = array<i64: 64, 128>}]} {
    %c0 = arith.constant 0 : index
    %c0_0 = arith.constant 0 : index
    %0 = vector.load %arg2[%c0, %c0_0] : memref<64x8xf32, #tpu.memory_space<vmem>>, vector<64x8xf32>
    %c0_1 = arith.constant 0 : index
    %c0_2 = arith.constant 0 : index
    %1 = vector.load %arg3[%c0_1, %c0_2] : memref<8x256xf32, #tpu.memory_space<vmem>>, vector<8x256xf32>
    %cst = arith.constant dense<0.000000e+00> : vector<64x256xf32>
    %2 = tpu.matmul %0, %1, %cst {dimension_numbers = #tpu.dot_dimension_numbers<[1], [0], [0], [1], [0, 0, 1, 1], [], []>} : vector<64x8xf32>, vector<8x256xf32>, vector<64x256xf32> -> vector<64x256xf32>
    %c0_3 = arith.constant 0 : index
    %c0_4 = arith.constant 0 : index
    %3 = vector.load %arg4[%c0_3, %c0_4] : memref<1x256xf32, #tpu.memory_space<vmem>>, vector<1x256xf32>
    %4 = vector.broadcast %3 : vector<1x256xf32> to vector<64x256xf32>
    %5 = arith.addf %2, %4 : vector<64x256xf32>
    %cst_5 = arith.constant dense<0.000000e+00> : vector<64xf32>
    %6 = vector.multi_reduction <add>, %5, %cst_5 [1] : vector<64x256xf32> to vector<64xf32>
    %7 = vector.shape_cast %6 : vector<64xf32> to vector<64x1xf32>
    %cst_6 = arith.constant 2.560000e+02 : f32
    %8 = vector.broadcast %cst_6 : f32 to vector<64x1xf32>
    %9 = arith.divf %7, %8 : vector<64x1xf32>
    %10 = vector.broadcast %9 : vector<64x1xf32> to vector<64x256xf32>
    %11 = arith.subf %5, %10 : vector<64x256xf32>
    %12 = arith.mulf %11, %11 : vector<64x256xf32>
    %cst_7 = arith.constant dense<0.000000e+00> : vector<64xf32>
    %13 = vector.multi_reduction <add>, %12, %cst_7 [1] : vector<64x256xf32> to vector<64xf32>
    %14 = vector.shape_cast %13 : vector<64xf32> to vector<64x1xf32>
    %cst_8 = arith.constant 2.560000e+02 : f32
    %15 = vector.broadcast %cst_8 : f32 to vector<64x1xf32>
    %16 = arith.divf %14, %15 : vector<64x1xf32>
    %c0_9 = arith.constant 0 : index
    %c0_10 = arith.constant 0 : index
    %17 = vector.load %arg5[%c0_9, %c0_10] : memref<1x256xf32, #tpu.memory_space<vmem>>, vector<1x256xf32>
    %cst_11 = arith.constant 9.99999974E-6 : f32
    %18 = vector.broadcast %cst_11 : f32 to vector<64x1xf32>
    %19 = arith.addf %16, %18 : vector<64x1xf32>
    %20 = math.rsqrt %19 : vector<64x1xf32>
    %21 = vector.broadcast %17 : vector<1x256xf32> to vector<64x256xf32>
    %22 = vector.broadcast %20 : vector<64x1xf32> to vector<64x256xf32>
    %23 = arith.mulf %21, %22 : vector<64x256xf32>
    %24 = arith.mulf %11, %23 : vector<64x256xf32>
    %c0_12 = arith.constant 0 : index
    %c0_13 = arith.constant 0 : index
    %25 = vector.load %arg6[%c0_12, %c0_13] : memref<1x256xf32, #tpu.memory_space<vmem>>, vector<1x256xf32>
    %26 = vector.broadcast %25 : vector<1x256xf32> to vector<64x256xf32>
    %27 = arith.addf %24, %26 : vector<64x256xf32>
    %cst_14 = arith.constant 0.000000e+00 : f32
    %28 = vector.broadcast %cst_14 : f32 to vector<64x256xf32>
    %29 = arith.maximumf %27, %28 : vector<64x256xf32>
    %c0_15 = arith.constant 0 : index
    %c0_16 = arith.constant 0 : index
    %30 = vector.load %arg7[%c0_15, %c0_16] : memref<256x128xf32, #tpu.memory_space<vmem>>, vector<256x128xf32>
    %cst_17 = arith.constant dense<0.000000e+00> : vector<64x128xf32>
    %31 = tpu.matmul %29, %30, %cst_17 {dimension_numbers = #tpu.dot_dimension_numbers<[1], [0], [0], [1], [0, 0, 1, 1], [], []>} : vector<64x256xf32>, vector<256x128xf32>, vector<64x128xf32> -> vector<64x128xf32>
    %c0_18 = arith.constant 0 : index
    %c0_19 = arith.constant 0 : index
    %32 = vector.load %arg8[%c0_18, %c0_19] : memref<1x128xf32, #tpu.memory_space<vmem>>, vector<1x128xf32>
    %33 = vector.broadcast %32 : vector<1x128xf32> to vector<64x128xf32>
    %34 = arith.addf %31, %33 : vector<64x128xf32>
    %c0_20 = arith.constant 0 : index
    %c0_21 = arith.constant 0 : index
    %35 = vector.load %arg9[%c0_20, %c0_21] : memref<64x128xf32, #tpu.memory_space<vmem>>, vector<64x128xf32>
    tpu.vector_store %arg9[%c0_20, %c0_21], %34 {strides = array<i32>} : memref<64x128xf32, #tpu.memory_space<vmem>>, vector<64x128xf32>,
    return
  }
  func.func @transform_0(%arg0: i32, %arg1: i32) -> (i32, i32) {
    %c0_i32 = arith.constant 0 : i32
    %c0_i32_0 = arith.constant 0 : i32
    return %arg1, %c0_i32 : i32, i32
  }
  func.func @transform_1(%arg0: i32, %arg1: i32) -> (i32, i32) {
    %c0_i32 = arith.constant 0 : i32
    %c0_i32_0 = arith.constant 0 : i32
    %c0_i32_1 = arith.constant 0 : i32
    return %c0_i32, %c0_i32_0 : i32, i32
  }
  func.func @transform_2(%arg0: i32, %arg1: i32) -> (i32, i32) {
    %c0_i32 = arith.constant 0 : i32
    %c0_i32_0 = arith.constant 0 : i32
    %c0_i32_1 = arith.constant 0 : i32
    return %c0_i32, %c0_i32_0 : i32, i32
  }
  func.func @transform_3(%arg0: i32, %arg1: i32) -> (i32, i32) {
    %c0_i32 = arith.constant 0 : i32
    %c0_i32_0 = arith.constant 0 : i32
    %c0_i32_1 = arith.constant 0 : i32
    return %c0_i32, %c0_i32_0 : i32, i32
  }
  func.func @transform_4(%arg0: i32, %arg1: i32) -> (i32, i32) {
    %c0_i32 = arith.constant 0 : i32
    %c0_i32_0 = arith.constant 0 : i32
    %c0_i32_1 = arith.constant 0 : i32
    return %c0_i32, %c0_i32_0 : i32, i32
  }
  func.func @transform_5(%arg0: i32, %arg1: i32) -> (i32, i32) {
    %c0_i32 = arith.constant 0 : i32
    %c0_i32_0 = arith.constant 0 : i32
    return %c0_i32, %arg0 : i32, i32
  }
  func.func @transform_6(%arg0: i32, %arg1: i32) -> (i32, i32) {
    %c0_i32 = arith.constant 0 : i32
    %c0_i32_0 = arith.constant 0 : i32
    return %c0_i32, %arg0 : i32, i32
  }
  func.func @transform_7(%arg0: i32, %arg1: i32) -> (i32, i32) {
    %c0_i32 = arith.constant 0 : i32
    return %arg1, %arg0 : i32, i32
  }
}

</mosaic_0001>

<bundles_post_ra>
// kernel: prompt_encoder_forward.1
= control target key start
LH: loop header
LB: loop body
LE: loop exit
PB: predicated region body
PF: predicated region fallthrough
CT: control target
= control target key end

     0   :  { %s1434_s24 = smov 0   ;;  %s1436_s25 = smov 0   ;;  %s1896_s0 = inlined_call_operand.vmem [shape: f32[192,8], index: 0, kind: input, shape index: {}]   ;;  %s1897_s1 = inlined_call_operand.vmem [shape: f32[8,256], index: 1, kind: input, shape index: {}]   ;;  %s1898_s2 = inlined_call_operand.vmem [shape: f32[1,256], index: 2, kind: input, shape index: {}]   ;;  %s1899_s3 = inlined_call_operand.vmem [shape: f32[1,256], index: 3, kind: input, shape index: {}]   ;;  %s1900_s4 = inlined_call_operand.vmem [shape: f32[1,256], index: 4, kind: input, shape index: {}]   ;;  %s1901_s5 = inlined_call_operand.vmem [shape: f32[256,256], index: 5, kind: input, shape index: {}]   ;;  %s1902_s6 = inlined_call_operand.vmem [shape: f32[1,256], index: 6, kind: input, shape index: {}]   ;;  %s1903_s7 = inlined_call_operand.vmem [shape: f32[192,256], index: 7, kind: output, shape index: {}]  }
   0x1   :  { %s1438_s26 = smov 0   ;;  %s1440_s27 = smov 0  }
   0x2   :  { %s1442_s28 = smov 0   ;;  %s1444_s29 = smov 0  }
   0x3   :  { %s1446_s30 = smov 0   ;;  %s1448_s8 = smov 0  }
   0x4   :  { %s1450_s9 = smov 0  }
   0x5 LB: > { %s26_s10 = sadd.s32 1, %s1383_s30  ;;  %s29_s11 = sadd.s32 1, %s1387_s8  ;;  %s1391_s9 = sphi %s1450_s9, %s17_s9   ;;  %s1387_s8 = sphi %s1448_s8, %s1913_s8   ;;  %s1383_s30 = sphi %s1446_s30, %s1912_s30   ;;  %s1379_s29 = sphi %s1444_s29, %s1911_s29   ;;  %s1375_s28 = sphi %s1442_s28, %s1910_s28   ;;  %s1371_s27 = sphi %s1440_s27, %s1909_s27   ;;  %s1367_s26 = sphi %s1438_s26, %s1908_s26   ;;  %s1363_s25 = sphi %s1436_s25, %s1907_s25   ;;  %s1359_s24 = sphi %s1434_s24, %s1906_s24  }
   0x6   : > { %p27_p0 = scmp.ge.s32.totalorder %s26_s10, 3  ;;  %p153_p1 = scmp.ne.s32.totalorder %s1371_s27, %s1367_s26 }
   0x7   : > { %s1163_s12 = sadd.s32 4294967295, %s1391_s9   ;;  %p154_p2 = scmp.eq.s32.totalorder %s1391_s9, 0 }
   0x8   : > { %s1915_s10 = smov (%p27_p0, %s26_s10), 0  ;;  %s1917_s11 = smov (!%p27_p0, %s29_s11), %s1387_s8 }
   0x9   : > { %p31_p3 = scmp.ge.s32.totalorder %s1917_s11, 2  ;;  %s195_s13 = ssub.s32 %s1383_s30, %s1915_s10 }
   0xa   : > { %p1490_p4 = por %p154_p2, %p153_p1  ;;  %p210_p5 = scmp.ne.s32.totalorder %s1363_s25, %s1359_s24 }
   0xb   : > { %s1919_s11 = smov (%p31_p3, %s1917_s11), 0  ;;  %s146_s15 = sadd.s32 1, %s1371_s27 }
   0xc   : > { %p211_p6 = scmp.eq.s32.totalorder %s1163_s12, 5  ;;  %s143_s16 = ssub.s32 %s1387_s8, %s1919_s11 }
   0xd   : > { %s200_s17 = sadd.s32 1, %s1363_s25  ;;  %p144_p7 = scmp.eq.s32.totalorder %s143_s16, 0 }
   0xe   : > { %s197_s18 = sor.u32 %s195_s13, %s143_s16  ;;  %p1502_p9 = por %p211_p6, %p210_p5 }
   0xf   : > { %p198_p8 = scmp.eq.s32.totalorder %s197_s18, 0  ;;  %p1166_p10 = scmp.ge.s32.totalorder %s1391_s9, 6 }
  0x10   : > { %s1507_s20 = scalar_select %p144_p7, %s1371_s27, %s146_s15  }
  0x11   : > { %s1510_s21 = scalar_select %p198_p8, %s1363_s25, %s200_s17  }
  0x12   : > { %245 = sbr.rel (%p1166_p10) target bundleno = 59 (0x3b), region = 32 }
  0x17   : > { %257 = sbr.rel (!%p1490_p4) target bundleno = 59 (0x3b), region = 40  ;;  %s259_s22 = sand.u32 (%p1490_p4), 1, %s1371_s27  }
  0x18   : > { %s1168_s23 = sshll.u32 (%p1490_p4), %s1387_s8, 3  ;;  %s1167_s12 = sshll.u32 (%p1490_p4), %s259_s22, 8 }
  0x19   : > { %s1520_s18 = scalar_lea.vmem (%p1490_p4), %s1901_s5, %s1168_s23  ;;  %s1525_s14 = scalar_lea.vmem (%p1490_p4), [#allocation2], %s1167_s12 }
  0x1a   : > { %v354_v0 = vld [vmem:[%s1520_s18] sm:$0xff] (%p1490_p4)  ;;  %v356_v1 = vld [vmem:[%s1520_s18 + $0x10] sm:$0xff] (%p1490_p4) }
  0x1b   : > { %v358_v2 = vld [vmem:[%s1520_s18 + $0x20] sm:$0xff] (%p1490_p4)  ;;  %355 = vst [vmem:[%s1525_s14] sm:$0xff] (%p1490_p4), %v354_v0  ;;  %v360_v3 = vld [vmem:[%s1520_s18 + $0x30] sm:$0xff] (%p1490_p4) }
  0x1c   : > { %357 = vst [vmem:[%s1525_s14 + $0x8] sm:$0xff] %v356_v1  ;;  %v362_v4 = vld [vmem:[%s1520_s18 + $0x40] sm:$0xff]  ;;  %v364_v5 = vld [vmem:[%s1520_s18 + $0x50] sm:$0xff] }
  0x1d   : > { %359 = vst [vmem:[%s1525_s14 + $0x10] sm:$0xff] %v358_v2  ;;  %v366_v6 = vld [vmem:[%s1520_s18 + $0x60] sm:$0xff]  ;;  %v368_v7 = vld [vmem:[%s1520_s18 + $0x70] sm:$0xff] }
  0x1e   : > { %361 = vst [vmem:[%s1525_s14 + $0x18] sm:$0xff] %v360_v3  ;;  %v370_v8 = vld [vmem:[%s1520_s18 + $0x80] sm:$0xff]  ;;  %v372_v9 = vld [vmem:[%s1520_s18 + $0x90] sm:$0xff] }
  0x1f   : > { %363 = vst [vmem:[%s1525_s14 + $0x20] sm:$0xff] %v362_v4  ;;  %v374_v10 = vld [vmem:[%s1520_s18 + $0xa0] sm:$0xff]  ;;  %v376_v11 = vld [vmem:[%s1520_s18 + $0xb0] sm:$0xff] }
  0x20   : > { %365 = vst [vmem:[%s1525_s14 + $0x28] sm:$0xff] %v364_v5  ;;  %v378_v12 = vld [vmem:[%s1520_s18 + $0xc0] sm:$0xff]  ;;  %v380_v13 = vld [vmem:[%s1520_s18 + $0xd0] sm:$0xff] }
  0x21   : > { %367 = vst [vmem:[%s1525_s14 + $0x30] sm:$0xff] %v366_v6  ;;  %v382_v14 = vld [vmem:[%s1520_s18 + $0xe0] sm:$0xff]  ;;  %v384_v15 = vld [vmem:[%s1520_s18 + $0xf0] sm:$0xff] }
  0x22   : > { %369 = vst [vmem:[%s1525_s14 + $0x38] sm:$0xff] %v368_v7  ;;  %v386_v16 = vld [vmem:[%s1520_s18 + $0x100] sm:$0xff]  ;;  %v388_v17 = vld [vmem:[%s1520_s18 + $0x110] sm:$0xff] }
  0x23   : > { %371 = vst [vmem:[%s1525_s14 + $0x40] sm:$0xff] %v370_v8  ;;  %v390_v18 = vld [vmem:[%s1520_s18 + $0x120] sm:$0xff]  ;;  %v392_v19 = vld [vmem:[%s1520_s18 + $0x130] sm:$0xff] }
  0x24   : > { %373 = vst [vmem:[%s1525_s14 + $0x48] sm:$0xff] %v372_v9  ;;  %v394_v20 = vld [vmem:[%s1520_s18 + $0x140] sm:$0xff]  ;;  %v396_v21 = vld [vmem:[%s1520_s18 + $0x150] sm:$0xff] }
  0x25   : > { %375 = vst [vmem:[%s1525_s14 + $0x50] sm:$0xff] %v374_v10  ;;  %v398_v22 = vld [vmem:[%s1520_s18 + $0x160] sm:$0xff]  ;;  %v400_v23 = vld [vmem:[%s1520_s18 + $0x170] sm:$0xff] }
  0x26   : > { %377 = vst [vmem:[%s1525_s14 + $0x58] sm:$0xff] %v376_v11  ;;  %v402_v24 = vld [vmem:[%s1520_s18 + $0x180] sm:$0xff]  ;;  %v404_v25 = vld [vmem:[%s1520_s18 + $0x190] sm:$0xff] }
  0x27   : > { %379 = vst [vmem:[%s1525_s14 + $0x60] sm:$0xff] %v378_v12  ;;  %v406_v26 = vld [vmem:[%s1520_s18 + $0x1a0] sm:$0xff]  ;;  %v408_v27 = vld [vmem:[%s1520_s18 + $0x1b0] sm:$0xff] }
  0x28   : > { %381 = vst [vmem:[%s1525_s14 + $0x68] sm:$0xff] %v380_v13  ;;  %v410_v28 = vld [vmem:[%s1520_s18 + $0x1c0] sm:$0xff]  ;;  %v412_v29 = vld [vmem:[%s1520_s18 + $0x1d0] sm:$0xff] }
  0x29   : > { %383 = vst [vmem:[%s1525_s14 + $0x70] sm:$0xff] %v382_v14  ;;  %v414_v30 = vld [vmem:[%s1520_s18 + $0x1e0] sm:$0xff]  ;;  %v416_v31 = vld [vmem:[%s1520_s18 + $0x1f0] sm:$0xff] }
  0x2a   : > { %385 = vst [vmem:[%s1525_s14 + $0x78] sm:$0xff] %v384_v15 }
  0x2b   : > { %387 = vst [vmem:[%s1525_s14 + $0x80] sm:$0xff] %v386_v16 }
  0x2c   : > { %389 = vst [vmem:[%s1525_s14 + $0x88] sm:$0xff] %v388_v17 }
  0x2d   : > { %391 = vst [vmem:[%s1525_s14 + $0x90] sm:$0xff] %v390_v18 }
  0x2e   : > { %393 = vst [vmem:[%s1525_s14 + $0x98] sm:$0xff] %v392_v19 }
  0x2f   : > { %395 = vst [vmem:[%s1525_s14 + $0xa0] sm:$0xff] %v394_v20 }
  0x30   : > { %397 = vst [vmem:[%s1525_s14 + $0xa8] sm:$0xff] %v396_v21 }
  0x31   : > { %399 = vst [vmem:[%s1525_s14 + $0xb0] sm:$0xff] %v398_v22 }
  0x32   : > { %401 = vst [vmem:[%s1525_s14 + $0xb8] sm:$0xff] %v400_v23 }
  0x33   : > { %403 = vst [vmem:[%s1525_s14 + $0xc0] sm:$0xff] %v402_v24 }
  0x34   : > { %405 = vst [vmem:[%s1525_s14 + $0xc8] sm:$0xff] %v404_v25 }
  0x35   : > { %407 = vst [vmem:[%s1525_s14 + $0xd0] sm:$0xff] %v406_v26 }
  0x36   : > { %409 = vst [vmem:[%s1525_s14 + $0xd8] sm:$0xff] %v408_v27 }
  0x37   : > { %411 = vst [vmem:[%s1525_s14 + $0xe0] sm:$0xff] %v410_v28 }
  0x38   : > { %413 = vst [vmem:[%s1525_s14 + $0xe8] sm:$0xff] %v412_v29 }
  0x39   : > { %415 = vst [vmem:[%s1525_s14 + $0xf0] sm:$0xff] %v414_v30 }
  0x3a   : > { %417 = vst [vmem:[%s1525_s14 + $0xf8] sm:$0xff] %v416_v31 }
  0x3b PF: > { %p1169_p11 = scmp.ge.s32.totalorder %s1391_s9, 1  ;;  %p428_p12 = scmp.lt.s32.totalorder %s1391_s9, 7 }
  0x3d   : > { %p429_p13 = pnand %p1169_p11, %p428_p12 }
  0x3e   : > { %s1172_s12 = sshll.u32 (!%p429_p13), %s1375_s28, 3  ;;  %p479_p1 = scmp.lt.s32.totalorder (!%p429_p13), %s1379_s29, 1 }
  0x3f   : > { %432 = sbr.rel (%p429_p13) target bundleno = 674 (0x2a2), region = 82  ;;  %p474_p0 = scmp.lt.s32.totalorder (!%p429_p13), %s1172_s12, 23 }
  0x40   : > { %s435_s16 = sand.u32 (!%p429_p13), 1, %s1367_s26  }
  0x41   : > { %s1170_s18 = sshll.u32 (!%p429_p13), %s435_s16, 8 }
  0x44   : > { %v491_v32 = vld [vmem:[%s1897_s1] sm:$0xff]  ;;  %v492_v33 = vld [vmem:[%s1897_s1 + $0x8] sm:$0xff]  ;;  %s1921_s12 = smov (!%p474_p0, %s1172_s12), 23  ;;  %vm499_vm0 = vcmask 64512   ;;  %v1393_v21 = vmov 256.0  }
  0x45   : > { %539 = vmatpush.msra.mxu0 %v491_v32  ;;  %580 = vmatpush.msra.mxu1 %v492_v33  ;;  %s1173_s13 = sshll.u32 %s1921_s12, 3  ;;  %v493_v44 = vld [vmem:[%s1898_s2] sm:$0x3]  ;;  %1303 = vrcp.f32 %v1393_v21  ;;  %s470_s12 = sand.u32 1, %s1359_s24  }
  0x46   : > { %s477_s14 = scalar_lea.vmem %s1896_s0, %s1173_s13  ;;  %v495_v45 = vperm.slane %v493_v44, 0  ;;  %v496_v46 = vperm.slane %v493_v44, 1  ;;  %s1196_s24 = sshll.u32 (%p1502_p9), %s1375_s28, 4 }
  0x47   : > { %v483_v34 = vld [vmem:[%s477_s14] sm:$0xff]  ;;  %v484_v35 = vld [vmem:[%s477_s14 + $0x8] sm:$0xff]  ;;  %v485_v36 = vld [vmem:[%s477_s14 + $0x10] sm:$0xff]  ;;  %s1727_s22 = scalar_select %p479_p1, %s1379_s29, 1 }
  0x48   : > { %1174 = vmatmul.msk.f32.vlgmr.msra.gmra.mxu0 %vm499_vm0, %v483_v34  ;;  %1182 = vmatmul.msk.f32.vlgmr.msra.gmra.mxu1 %vm499_vm0, %v483_v34  ;;  %v486_v37 = vld [vmem:[%s477_s14 + $0x18] sm:$0xff]  ;;  %v487_v38 = vld [vmem:[%s477_s14 + $0x20] sm:$0xff]  ;;  %v488_v39 = vld [vmem:[%s477_s14 + $0x28] sm:$0xff] }
  0x49   : > { %v489_v40 = vld [vmem:[%s477_s14 + $0x30] sm:$0xff]  ;;  %v490_v41 = vld [vmem:[%s477_s14 + $0x38] sm:$0xff]  ;;  %s481_s13 = scalar_lea.vmem %s1902_s6, %s1727_s22  ;;  %s1734_s14 = scalar_lea.vmem [#allocation2], %s1170_s18 }
  0x4a   : > { %s1008_s22 = sadd.s32 (%p1502_p9), %s1379_s29, %s1196_s24 }
  0x4b   : > { %v1304_v22 = vpop.eup %1303 }
  0x4c   : > { %v631_v23 = vmul.f32 256.0, %v1304_v22  ;;  %vm635_vm1 = vweird.f32 %v1304_v22 }
  0x4e   : > { %v632_v24 = vsub.f32 1.0, %v631_v23  ;;  %v903_v23 = vld [vmem:[%s1734_s14 + $0xf0] sm:$0xff] }
  0x50   : > { %1175 = vmatmul.msk.f32.gmra.mxu0 %vm499_vm0, %v484_v35  ;;  %1183 = vmatmul.msk.f32.gmra.mxu1 %vm499_vm0, %v484_v35  ;;  %v633_v25 = vmul.f32 %v1304_v22, %v632_v24  ;;  %v886_v24 = vld [vmem:[%s1734_s14 + $0x68] sm:$0xff] }
  0x52   : > { %v634_v26 = vadd.f32 %v1304_v22, %v633_v25  ;;  %v902_v25 = vld [vmem:[%s1734_s14 + $0xe8] sm:$0xff] }
  0x54   : > { %v1643_v27 = vsel %vm635_vm1, %v1304_v22, %v634_v26  ;;  %v887_v22 = vld [vmem:[%s1734_s14 + $0x70] sm:$0xff]  ;;  %v885_v26 = vld [vmem:[%s1734_s14 + $0x60] sm:$0xff] }
  0x58   : > { %1176 = vmatmul.msk.f32.gmra.mxu0 %vm499_vm0, %v485_v36  ;;  %1184 = vmatmul.msk.f32.gmra.mxu1 %vm499_vm0, %v485_v36 }
  0x60   : > { %1177 = vmatmul.msk.f32.gmra.mxu0 %vm499_vm0, %v486_v37  ;;  %1185 = vmatmul.msk.f32.gmra.mxu1 %vm499_vm0, %v486_v37 }
  0x68   : > { %1178 = vmatmul.msk.f32.gmra.mxu0 %vm499_vm0, %v487_v38  ;;  %1186 = vmatmul.msk.f32.gmra.mxu1 %vm499_vm0, %v487_v38 }
  0x70   : > { %1179 = vmatmul.msk.f32.gmra.mxu0 %vm499_vm0, %v488_v39  ;;  %1187 = vmatmul.msk.f32.gmra.mxu1 %vm499_vm0, %v488_v39 }
  0x78   : > { %1180 = vmatmul.msk.f32.gmra.mxu0 %vm499_vm0, %v489_v40  ;;  %1188 = vmatmul.msk.f32.gmra.mxu1 %vm499_vm0, %v489_v40 }
  0x80   : > { %1181 = vmatmul.msk.f32.gmra.mxu0 %vm499_vm0, %v490_v41  ;;  %1189 = vmatmul.msk.f32.gmra.mxu1 %vm499_vm0, %v490_v41 }
  0xc5   : > { %v541_v42 = vpop.f32.mrf.mxu0  ;;  %v582_v43 = vpop.f32.mrf.mxu1 }
  0xc6   : > { %v1631_v13 = vadd.f32 %v541_v42, %v495_v45  ;;  %v1633_v14 = vadd.f32 %v582_v43, %v496_v46 }
  0xc8   : > { %v606_v20 = vadd.f32 %v1633_v14, %v1631_v13 }
  0xcd   : > { %v544_v47 = vpop.f32.mrf.mxu0  ;;  %v585_v48 = vpop.f32.mrf.mxu1 }
  0xce   : > { %v545_v49 = vadd.f32 %v544_v47, %v495_v45  ;;  %v586_v50 = vadd.f32 %v585_v48, %v496_v46 }
  0xd0   : > { %v609_v51 = vadd.f32 %v586_v50, %v545_v49 }
  0xd2   : > { %610 = vadd.xlane.f32.xlu0 %v609_v51 }
  0xd5   : > { %v547_v52 = vpop.f32.mrf.mxu0  ;;  %v588_v53 = vpop.f32.mrf.mxu1 }
  0xd6   : > { %v548_v54 = vadd.f32 %v547_v52, %v495_v45  ;;  %v589_v55 = vadd.f32 %v588_v53, %v496_v46 }
  0xd8   : > { %v612_v56 = vadd.f32 %v589_v55, %v548_v54 }
  0xda   : > { %613 = vadd.xlane.f32.xlu0 %v612_v56 }
  0xdd   : > { %v550_v57 = vpop.f32.mrf.mxu0  ;;  %v591_v58 = vpop.f32.mrf.mxu1 }
  0xde   : > { %v551_v59 = vadd.f32 %v550_v57, %v495_v45  ;;  %v592_v60 = vadd.f32 %v591_v58, %v496_v46 }
  0xe0   : > { %v615_v61 = vadd.f32 %v592_v60, %v551_v59 }
  0xe2   : > { %616 = vadd.xlane.f32.xlu1 %v615_v61 }
  0xe5   : > { %v553_v62 = vpop.f32.mrf.mxu0  ;;  %v594_v63 = vpop.f32.mrf.mxu1 }
  0xe6   : > { %v554_v0 = vadd.f32 %v553_v62, %v495_v45  ;;  %v595_v1 = vadd.f32 %v594_v63, %v496_v46 }
  0xe8   : > { %v618_v2 = vadd.f32 %v595_v1, %v554_v0 }
  0xea   : > { %619 = vadd.xlane.f32.xlu1 %v618_v2 }
  0xed   : > { %v556_v3 = vpop.f32.mrf.mxu0  ;;  %v597_v4 = vpop.f32.mrf.mxu1 }
  0xee   : > { %v1619_v5 = vadd.f32 %v556_v3, %v495_v45  ;;  %v1621_v6 = vadd.f32 %v597_v4, %v496_v46 }
  0xf0   : > { %v621_v7 = vadd.f32 %v1621_v6, %v1619_v5 }
  0xf2   : > { %622 = vadd.xlane.f32.xlu2 %v621_v7 }
  0xf5   : > { %v559_v8 = vpop.f32.mrf.mxu0  ;;  %v600_v9 = vpop.f32.mrf.mxu1 }
  0xf6   : > { %v1625_v10 = vadd.f32 %v559_v8, %v495_v45  ;;  %v1627_v11 = vadd.f32 %v600_v9, %v496_v46 }
  0xf8   : > { %v624_v12 = vadd.f32 %v1627_v11, %v1625_v10 }
  0xfa   : > { %625 = vadd.xlane.f32.xlu2 %v624_v12 }
  0xfd   : > { %v562_v15 = vpop.f32.mrf.mxu0  ;;  %v603_v16 = vpop.f32.mrf.mxu1 }
  0xfe   : > { %v1635_v17 = vadd.f32 %v562_v15, %v495_v45  ;;  %v1637_v18 = vadd.f32 %v603_v16, %v496_v46 }
 0x100   : > { %v627_v19 = vadd.f32 %v1637_v18, %v1635_v17 }
 0x102   : > { %628 = vadd.xlane.f32.xlu0 %v627_v19  ;;  %607 = vadd.xlane.f32.xlu2 %v606_v20 }
 0x145   : > { %v611_v28 = vpop.xlane.xlu0 %610 }
 0x146   : > { %v638_v29 = vmul.f32 %v1643_v27, %v611_v28  ;;  %v901_v28 = vld [vmem:[%s1734_s14 + $0xe0] sm:$0xff] }
 0x148   : > { %v1646_v30 = vsub.f32 %v545_v49, %v638_v29  ;;  %v1648_v31 = vsub.f32 %v586_v50, %v638_v29  ;;  %v884_v29 = vld [vmem:[%s1734_s14 + $0x58] sm:$0xff] }
 0x14a   : > { %v663_v32 = vmul.f32 %v1646_v30, %v1646_v30  ;;  %v664_v33 = vmul.f32 %v1648_v31, %v1648_v31 }
 0x14c   : > { %v680_v34 = vadd.f32 %v664_v33, %v663_v32  ;;  %v900_v32 = vld [vmem:[%s1734_s14 + $0xd8] sm:$0xff]  ;;  %v883_v33 = vld [vmem:[%s1734_s14 + $0x50] sm:$0xff] }
 0x14d   : > { %v614_v35 = vpop.xlane.xlu0 %613 }
 0x14e   : > { %v639_v36 = vmul.f32 %v1643_v27, %v614_v35  ;;  %681 = vadd.xlane.f32.xlu1 %v680_v34  ;;  %v899_v34 = vld [vmem:[%s1734_s14 + $0xd0] sm:$0xff]  ;;  %v882_v35 = vld [vmem:[%s1734_s14 + $0x48] sm:$0xff] }
 0x150   : > { %v1655_v37 = vsub.f32 %v548_v54, %v639_v36  ;;  %v1657_v38 = vsub.f32 %v589_v55, %v639_v36  ;;  %v898_v36 = vld [vmem:[%s1734_s14 + $0xc8] sm:$0xff] }
 0x152   : > { %v665_v39 = vmul.f32 %v1655_v37, %v1655_v37  ;;  %v666_v40 = vmul.f32 %v1657_v38, %v1657_v38 }
 0x154   : > { %v683_v41 = vadd.f32 %v666_v40, %v665_v39  ;;  %v881_v39 = vld [vmem:[%s1734_s14 + $0x40] sm:$0xff] }
 0x155   : > { %v617_v42 = vpop.xlane.xlu1 %616  ;;  %v897_v40 = vld [vmem:[%s1734_s14 + $0xc0] sm:$0xff] }
 0x156   : > { %v640_v43 = vmul.f32 %v1643_v27, %v617_v42  ;;  %684 = vadd.xlane.f32.xlu0 %v683_v41  ;;  %v880_v41 = vld [vmem:[%s1734_s14 + $0x38] sm:$0xff] }
 0x157   : > { %v896_v42 = vld [vmem:[%s1734_s14 + $0xb8] sm:$0xff] }
 0x158   : > { %v1664_v44 = vsub.f32 %v551_v59, %v640_v43  ;;  %v1666_v45 = vsub.f32 %v592_v60, %v640_v43  ;;  %v879_v43 = vld [vmem:[%s1734_s14 + $0x30] sm:$0xff] }
 0x15a   : > { %v667_v46 = vmul.f32 %v1664_v44, %v1664_v44  ;;  %v668_v47 = vmul.f32 %v1666_v45, %v1666_v45 }
 0x15c   : > { %v686_v48 = vadd.f32 %v668_v47, %v667_v46  ;;  %v895_v46 = vld [vmem:[%s1734_s14 + $0xb0] sm:$0xff]  ;;  %v878_v47 = vld [vmem:[%s1734_s14 + $0x28] sm:$0xff] }
 0x15d   : > { %v620_v49 = vpop.xlane.xlu1 %619 }
 0x15e   : > { %v641_v50 = vmul.f32 %v1643_v27, %v620_v49  ;;  %687 = vadd.xlane.f32.xlu1 %v686_v48  ;;  %v894_v48 = vld [vmem:[%s1734_s14 + $0xa8] sm:$0xff]  ;;  %v877_v49 = vld [vmem:[%s1734_s14 + $0x20] sm:$0xff] }
 0x160   : > { %v1673_v51 = vsub.f32 %v554_v0, %v641_v50  ;;  %v1675_v52 = vsub.f32 %v595_v1, %v641_v50  ;;  %v893_v50 = vld [vmem:[%s1734_s14 + $0xa0] sm:$0xff] }
 0x162   : > { %v669_v53 = vmul.f32 %v1673_v51, %v1673_v51  ;;  %v670_v54 = vmul.f32 %v1675_v52, %v1675_v52 }
 0x164   : > { %v689_v55 = vadd.f32 %v670_v54, %v669_v53  ;;  %v876_v53 = vld [vmem:[%s1734_s14 + $0x18] sm:$0xff] }
 0x165   : > { %v623_v56 = vpop.xlane.xlu2 %622  ;;  %v892_v54 = vld [vmem:[%s1734_s14 + $0x98] sm:$0xff] }
 0x166   : > { %v642_v57 = vmul.f32 %v1643_v27, %v623_v56  ;;  %690 = vadd.xlane.f32.xlu2 %v689_v55  ;;  %v875_v55 = vld [vmem:[%s1734_s14 + $0x10] sm:$0xff] }
 0x167   : > { %v891_v56 = vld [vmem:[%s1734_s14 + $0x90] sm:$0xff] }
 0x168   : > { %v1683_v58 = vsub.f32 %v1619_v5, %v642_v57  ;;  %v1686_v59 = vsub.f32 %v1621_v6, %v642_v57  ;;  %v874_v57 = vld [vmem:[%s1734_s14 + $0x8] sm:$0xff] }
 0x16a   : > { %v671_v60 = vmul.f32 %v1683_v58, %v1683_v58  ;;  %v672_v61 = vmul.f32 %v1686_v59, %v1686_v59 }
 0x16c   : > { %v692_v62 = vadd.f32 %v672_v61, %v671_v60  ;;  %v890_v60 = vld [vmem:[%s1734_s14 + $0x88] sm:$0xff]  ;;  %v873_v61 = vld [vmem:[%s1734_s14] sm:$0xff] }
 0x16d   : > { %v626_v63 = vpop.xlane.xlu2 %625 }
 0x16e   : > { %v643_v0 = vmul.f32 %v1643_v27, %v626_v63  ;;  %693 = vadd.xlane.f32.xlu0 %v692_v62  ;;  %v889_v62 = vld [vmem:[%s1734_s14 + $0x80] sm:$0xff] }
 0x170   : > { %v1694_v1 = vsub.f32 %v1625_v10, %v643_v0  ;;  %v1697_v2 = vsub.f32 %v1627_v11, %v643_v0 }
 0x172   : > { %v673_v3 = vmul.f32 %v1694_v1, %v1694_v1  ;;  %v674_v4 = vmul.f32 %v1697_v2, %v1697_v2 }
 0x174   : > { %v695_v5 = vadd.f32 %v674_v4, %v673_v3 }
 0x175   : > { %v629_v6 = vpop.xlane.xlu0 %628  ;;  %v608_v7 = vpop.xlane.xlu2 %607 }
 0x176   : > { %v644_v8 = vmul.f32 %v1643_v27, %v629_v6  ;;  %v637_v9 = vmul.f32 %v1643_v27, %v608_v7  ;;  %696 = vadd.xlane.f32.xlu1 %v695_v5 }
 0x178   : > { %v1706_v10 = vsub.f32 %v1635_v17, %v644_v8  ;;  %v1709_v11 = vsub.f32 %v1637_v18, %v644_v8  ;;  %v1712_v12 = vsub.f32 %v1631_v13, %v637_v9  ;;  %v1715_v15 = vsub.f32 %v1633_v14, %v637_v9  ;;  %v888_v13 = vld [vmem:[%s1734_s14 + $0x78] sm:$0xff] }
 0x179   : > { %v904_v14 = vld [vmem:[%s1734_s14 + $0xf8] sm:$0xff]  ;;  %1197 = vmatpush.msra.mxu2 %v888_v13  ;;  %909 = vmatpush.msrb.mxu0 %v888_v13  ;;  %s1171_s14 = sshll.u32 %s470_s12, 6 }
 0x17a   : > { %v675_v16 = vmul.f32 %v1706_v10, %v1706_v10  ;;  %v676_v19 = vmul.f32 %v1709_v11, %v1709_v11  ;;  %v661_v20 = vmul.f32 %v1712_v12, %v1712_v12  ;;  %v662_v17 = vmul.f32 %v1715_v15, %v1715_v15  ;;  %1213 = vmatpush.msra.mxu3 %v904_v14  ;;  %s1844_s26 = scalar_lea.vmem [#allocation3], %s1171_s14 }
 0x17b   : > { %950 = vmatpush.msrb.mxu1 %v904_v14  ;;  %1198 = vmatpush.msra.mxu2 %v887_v22 }
 0x17c   : > { %v698_v18 = vadd.f32 %v676_v19, %v675_v16  ;;  %v677_v21 = vadd.f32 %v662_v17, %v661_v20  ;;  %1214 = vmatpush.msra.mxu3 %v903_v23  ;;  %910 = vmatpush.msrb.mxu0 %v887_v22  ;;  %v709_v20 = vld [vmem:[%s1899_s3] sm:$0x3] }
 0x17d   : > { %951 = vmatpush.msrb.mxu1 %v903_v23  ;;  %1199 = vmatpush.msra.mxu2 %v886_v24  ;;  %v1774_v14 = vperm.slane %v709_v20, 0  ;;  %v1776_v22 = vperm.slane %v709_v20, 1 }
 0x17e   : > { %699 = vadd.xlane.f32.xlu2 %v698_v18  ;;  %678 = vadd.xlane.f32.xlu0 %v677_v21 }
 0x17f   : > { %1215 = vmatpush.msra.mxu3 %v902_v25  ;;  %911 = vmatpush.msrb.mxu0 %v886_v24 }
 0x180   : > { %952 = vmatpush.msrb.mxu1 %v902_v25  ;;  %1200 = vmatpush.msra.mxu2 %v885_v26  ;;  %v835_v25 = vld [vmem:[%s1900_s4] sm:$0x3] }
 0x181   : > { %1216 = vmatpush.msra.mxu3 %v901_v28  ;;  %912 = vmatpush.msrb.mxu0 %v885_v26 }
 0x182   : > { %953 = vmatpush.msrb.mxu1 %v901_v28  ;;  %1201 = vmatpush.msra.mxu2 %v884_v29 }
 0x183   : > { %1217 = vmatpush.msra.mxu3 %v900_v32  ;;  %913 = vmatpush.msrb.mxu0 %v884_v29 }
 0x184   : > { %954 = vmatpush.msrb.mxu1 %v900_v32  ;;  %1202 = vmatpush.msra.mxu2 %v883_v33  ;;  %v1782_v32 = vperm.slane %v835_v25, 0 }
 0x185   : > { %1218 = vmatpush.msra.mxu3 %v899_v34  ;;  %914 = vmatpush.msrb.mxu0 %v883_v33 }
 0x186   : > { %955 = vmatpush.msrb.mxu1 %v899_v34  ;;  %1203 = vmatpush.msra.mxu2 %v882_v35  ;;  %v1785_v34 = vperm.slane %v835_v25, 1 }
 0x187   : > { %1219 = vmatpush.msra.mxu3 %v898_v36  ;;  %915 = vmatpush.msrb.mxu0 %v882_v35 }
 0x188   : > { %956 = vmatpush.msrb.mxu1 %v898_v36  ;;  %1204 = vmatpush.msra.mxu2 %v881_v39 }
 0x189   : > { %1220 = vmatpush.msra.mxu3 %v897_v40  ;;  %916 = vmatpush.msrb.mxu0 %v881_v39 }
 0x18a   : > { %957 = vmatpush.msrb.mxu1 %v897_v40  ;;  %1205 = vmatpush.msra.mxu2 %v880_v41 }
 0x18b   : > { %1221 = vmatpush.msra.mxu3 %v896_v42  ;;  %917 = vmatpush.msrb.mxu0 %v880_v41 }
 0x18c   : > { %958 = vmatpush.msrb.mxu1 %v896_v42  ;;  %1206 = vmatpush.msra.mxu2 %v879_v43 }
 0x18d   : > { %1222 = vmatpush.msra.mxu3 %v895_v46  ;;  %918 = vmatpush.msrb.mxu0 %v879_v43 }
 0x18e   : > { %959 = vmatpush.msrb.mxu1 %v895_v46  ;;  %1207 = vmatpush.msra.mxu2 %v878_v47 }
 0x18f   : > { %1223 = vmatpush.msra.mxu3 %v894_v48  ;;  %919 = vmatpush.msrb.mxu0 %v878_v47 }
 0x190   : > { %960 = vmatpush.msrb.mxu1 %v894_v48  ;;  %1208 = vmatpush.msra.mxu2 %v877_v49 }
 0x191   : > { %1224 = vmatpush.msra.mxu3 %v893_v50  ;;  %920 = vmatpush.msrb.mxu0 %v877_v49 }
 0x192   : > { %961 = vmatpush.msrb.mxu1 %v893_v50  ;;  %1209 = vmatpush.msra.mxu2 %v876_v53 }
 0x193   : > { %1225 = vmatpush.msra.mxu3 %v892_v54  ;;  %921 = vmatpush.msrb.mxu0 %v876_v53 }
 0x194   : > { %962 = vmatpush.msrb.mxu1 %v892_v54  ;;  %1210 = vmatpush.msra.mxu2 %v875_v55 }
 0x195   : > { %1226 = vmatpush.msra.mxu3 %v891_v56  ;;  %922 = vmatpush.msrb.mxu0 %v875_v55 }
 0x196   : > { %963 = vmatpush.msrb.mxu1 %v891_v56  ;;  %1211 = vmatpush.msra.mxu2 %v874_v57 }
 0x197   : > { %1227 = vmatpush.msra.mxu3 %v890_v60  ;;  %923 = vmatpush.msrb.mxu0 %v874_v57 }
 0x198   : > { %964 = vmatpush.msrb.mxu1 %v890_v60  ;;  %1212 = vmatpush.msra.mxu2 %v873_v61 }
 0x199   : > { %1228 = vmatpush.msra.mxu3 %v889_v62  ;;  %924 = vmatpush.msrb.mxu0 %v873_v61 }
 0x19a   : > { %965 = vmatpush.msrb.mxu1 %v889_v62 }
 0x1c1   : > { %v682_v63 = vpop.xlane.xlu1 %681 }
 0x1c2   : > { %v702_v0 = vmul.f32 %v682_v63, %v1643_v27 }
 0x1c4   : > { %v711_v3 = vadd.f32 1e-05, %v702_v0 }
 0x1c6   : > { %1305 = vrsqrt.f32 %v711_v3  ;;  %vm734_vm3 = vweird.f32 %v711_v3 }
 0x1c9   : > { %v685_v4 = vpop.xlane.xlu0 %684 }
 0x1ca   : > { %v703_v5 = vmul.f32 %v685_v4, %v1643_v27 }
 0x1cc   : > { %v1306_v6 = vpop.eup %1305  ;;  %v712_v7 = vadd.f32 1e-05, %v703_v5 }
 0x1cd   : > { %v729_v8 = vmul.f32 %v1306_v6, %v711_v3  ;;  %vm735_vm2 = vweird.f32 %v1306_v6 }
 0x1ce   : > { %1307 = vrsqrt.f32 %v712_v7  ;;  %vm736_vm4 = vmor %vm734_vm3, %vm735_vm2  ;;  %vm744_vm6 = vweird.f32 %v712_v7 }
 0x1cf   : > { %v730_v9 = vmul.f32 %v1306_v6, %v729_v8 }
 0x1d1   : > { %v731_v16 = vmul.f32 0.5, %v730_v9  ;;  %v688_v19 = vpop.xlane.xlu1 %687 }
 0x1d2   : > { %v704_v17 = vmul.f32 %v688_v19, %v1643_v27 }
 0x1d3   : > { %v732_v18 = vsub.f32 1.5, %v731_v16 }
 0x1d4   : > { %v1308_v21 = vpop.eup %1307  ;;  %v713_v13 = vadd.f32 1e-05, %v704_v17 }
 0x1d5   : > { %v733_v23 = vmul.f32 %v1306_v6, %v732_v18  ;;  %v739_v24 = vmul.f32 %v1308_v21, %v712_v7  ;;  %vm745_vm5 = vweird.f32 %v1308_v21 }
 0x1d6   : > { %1309 = vrsqrt.f32 %v713_v13  ;;  %vm746_vm7 = vmor %vm744_vm6, %vm745_vm5  ;;  %vm754_vm9 = vweird.f32 %v713_v13 }
 0x1d7   : > { %v740_v26 = vmul.f32 %v1308_v21, %v739_v24  ;;  %v737_v28 = vsel %vm736_vm4, %v1306_v6, %v733_v23 }
 0x1d8   : > { %v805_v29 = vmul.f32 %v1774_v14, %v737_v28  ;;  %v806_v33 = vmul.f32 %v1776_v22, %v737_v28 }
 0x1d9   : > { %v741_v35 = vmul.f32 0.5, %v740_v26  ;;  %v691_v36 = vpop.xlane.xlu2 %690 }
 0x1da   : > { %v705_v39 = vmul.f32 %v691_v36, %v1643_v27  ;;  %v821_v40 = vmul.f32 %v805_v29, %v1646_v30  ;;  %v822_v41 = vmul.f32 %v806_v33, %v1648_v31 }
 0x1db   : > { %v742_v42 = vsub.f32 1.5, %v741_v35 }
 0x1dc   : > { %v1310_v43 = vpop.eup %1309  ;;  %v714_v46 = vadd.f32 1e-05, %v705_v39  ;;  %v843_v47 = vadd.f32 %v1782_v32, %v821_v40  ;;  %v844_v48 = vadd.f32 %v1785_v34, %v822_v41 }
 0x1dd   : > { %v743_v49 = vmul.f32 %v1308_v21, %v742_v42  ;;  %v749_v50 = vmul.f32 %v1310_v43, %v713_v13  ;;  %vm755_vm8 = vweird.f32 %v1310_v43 }
 0x1de   : > { %1311 = vrsqrt.f32 %v714_v46  ;;  %v859_v53 = vmax.f32 %v843_v47, 0.0  ;;  %v860_v54 = vmax.f32 %v844_v48, 0.0  ;;  %vm756_vm10 = vmor %vm754_vm9, %vm755_vm8  ;;  %vm764_vm12 = vweird.f32 %v714_v46 }
 0x1df   : > { %v750_v55 = vmul.f32 %v1310_v43, %v749_v50  ;;  %v747_v56 = vsel %vm746_vm7, %v1308_v21, %v743_v49 }
 0x1e0   : > { %928 = vmatmul.f32.vlgmr.msra.gmra.mxu2 %v859_v53  ;;  %969 = vmatmul.f32.vlgmr.msra.gmra.mxu3 %v860_v54  ;;  %v807_v30 = vmul.f32 %v1774_v14, %v747_v56  ;;  %v808_v31 = vmul.f32 %v1776_v22, %v747_v56 }
 0x1e1   : > { %v751_v57 = vmul.f32 0.5, %v750_v55  ;;  %v694_v60 = vpop.xlane.xlu0 %693 }
 0x1e2   : > { %v706_v61 = vmul.f32 %v694_v60, %v1643_v27  ;;  %v823_v62 = vmul.f32 %v807_v30, %v1655_v37  ;;  %v824_v63 = vmul.f32 %v808_v31, %v1657_v38 }
 0x1e3   : > { %v752_v0 = vsub.f32 1.5, %v751_v57 }
 0x1e4   : > { %v1312_v3 = vpop.eup %1311  ;;  %v715_v4 = vadd.f32 1e-05, %v706_v61  ;;  %v845_v5 = vadd.f32 %v1782_v32, %v823_v62  ;;  %v846_v6 = vadd.f32 %v1785_v34, %v824_v63 }
 0x1e5   : > { %v753_v7 = vmul.f32 %v1310_v43, %v752_v0  ;;  %v759_v8 = vmul.f32 %v1312_v3, %v714_v46  ;;  %vm765_vm11 = vweird.f32 %v1312_v3 }
 0x1e6   : > { %1313 = vrsqrt.f32 %v715_v4  ;;  %v861_v9 = vmax.f32 %v845_v5, 0.0  ;;  %v862_v16 = vmax.f32 %v846_v6, 0.0  ;;  %vm766_vm13 = vmor %vm764_vm12, %vm765_vm11  ;;  %vm774_vm15 = vweird.f32 %v715_v4 }
 0x1e7   : > { %v760_v19 = vmul.f32 %v1312_v3, %v759_v8  ;;  %v757_v20 = vsel %vm756_vm10, %v1310_v43, %v753_v7 }
 0x1e8   : > { %931 = vmatmul.f32.gmra.mxu2 %v861_v9  ;;  %972 = vmatmul.f32.gmra.mxu3 %v862_v16  ;;  %v809_v37 = vmul.f32 %v1774_v14, %v757_v20  ;;  %v810_v38 = vmul.f32 %v1776_v22, %v757_v20 }
 0x1e9   : > { %v761_v17 = vmul.f32 0.5, %v760_v19  ;;  %v697_v18 = vpop.xlane.xlu1 %696 }
 0x1ea   : > { %v707_v21 = vmul.f32 %v697_v18, %v1643_v27  ;;  %v825_v23 = vmul.f32 %v809_v37, %v1664_v44  ;;  %v826_v13 = vmul.f32 %v810_v38, %v1666_v45 }
 0x1eb   : > { %v762_v24 = vsub.f32 1.5, %v761_v17 }
 0x1ec   : > { %v1314_v25 = vpop.eup %1313  ;;  %v716_v26 = vadd.f32 1e-05, %v707_v21  ;;  %v847_v28 = vadd.f32 %v1782_v32, %v825_v23  ;;  %v848_v29 = vadd.f32 %v1785_v34, %v826_v13 }
 0x1ed   : > { %v763_v33 = vmul.f32 %v1312_v3, %v762_v24  ;;  %v769_v35 = vmul.f32 %v1314_v25, %v715_v4  ;;  %vm775_vm14 = vweird.f32 %v1314_v25 }
 0x1ee   : > { %1315 = vrsqrt.f32 %v716_v26  ;;  %v863_v36 = vmax.f32 %v847_v28, 0.0  ;;  %v864_v39 = vmax.f32 %v848_v29, 0.0  ;;  %vm776_vm0 = vmor %vm774_vm15, %vm775_vm14  ;;  %vm784_vm2 = vweird.f32 %v716_v26 }
 0x1ef   : > { %v770_v40 = vmul.f32 %v1314_v25, %v769_v35  ;;  %v767_v41 = vsel %vm766_vm13, %v1312_v3, %v763_v33 }
 0x1f0   : > { %934 = vmatmul.f32.gmra.mxu2 %v863_v36  ;;  %975 = vmatmul.f32.gmra.mxu3 %v864_v39  ;;  %v811_v44 = vmul.f32 %v1774_v14, %v767_v41  ;;  %v812_v45 = vmul.f32 %v1776_v22, %v767_v41 }
 0x1f1   : > { %v771_v42 = vmul.f32 0.5, %v770_v40  ;;  %v679_v43 = vpop.xlane.xlu0 %678  ;;  %v700_v47 = vpop.xlane.xlu2 %699 }
 0x1f2   : > { %v701_v48 = vmul.f32 %v679_v43, %v1643_v27  ;;  %v708_v46 = vmul.f32 %v700_v47, %v1643_v27  ;;  %v827_v49 = vmul.f32 %v811_v44, %v1673_v51  ;;  %v828_v50 = vmul.f32 %v812_v45, %v1675_v52 }
 0x1f3   : > { %v772_v53 = vsub.f32 1.5, %v771_v42 }
 0x1f4   : > { %v1316_v54 = vpop.eup %1315  ;;  %v710_v55 = vadd.f32 1e-05, %v701_v48  ;;  %v717_v56 = vadd.f32 1e-05, %v708_v46  ;;  %v849_v30 = vadd.f32 %v1782_v32, %v827_v49  ;;  %v850_v31 = vadd.f32 %v1785_v34, %v828_v50 }
 0x1f5   : > { %v773_v57 = vmul.f32 %v1314_v25, %v772_v53  ;;  %v779_v60 = vmul.f32 %v1316_v54, %v716_v26  ;;  %vm785_vm1 = vweird.f32 %v1316_v54 }
 0x1f6   : > { %1317 = vrsqrt.f32 %v710_v55  ;;  %v865_v61 = vmax.f32 %v849_v30, 0.0  ;;  %v866_v51 = vmax.f32 %v850_v31, 0.0  ;;  %vm786_vm3 = vmor %vm784_vm2, %vm785_vm1  ;;  %vm724_vm6 = vweird.f32 %v710_v55 }
 0x1f7   : > { %v780_v27 = vmul.f32 %v1316_v54, %v779_v60  ;;  %1319 = vrsqrt.f32 %v717_v56  ;;  %v777_v62 = vsel %vm776_vm0, %v1314_v25, %v773_v57  ;;  %vm794_vm8 = vweird.f32 %v717_v56 }
 0x1f8   : > { %937 = vmatmul.f32.gmra.mxu2 %v865_v61  ;;  %v813_v52 = vmul.f32 %v1774_v14, %v777_v62  ;;  %v814_v63 = vmul.f32 %v1776_v22, %v777_v62  ;;  %978 = vmatmul.f32.gmra.mxu3 %v866_v51 }
 0x1f9   : > { %v781_v0 = vmul.f32 0.5, %v780_v27 }
 0x1fa   : > { %v829_v3 = vmul.f32 %v813_v52, %v1683_v58  ;;  %v830_v5 = vmul.f32 %v814_v63, %v1686_v59 }
 0x1fb   : > { %v782_v4 = vsub.f32 1.5, %v781_v0 }
 0x1fc   : > { %v1318_v6 = vpop.eup %1317  ;;  %v851_v7 = vadd.f32 %v1782_v32, %v829_v3  ;;  %v852_v8 = vadd.f32 %v1785_v34, %v830_v5 }
 0x1fd   : > { %v1320_v9 = vpop.eup %1319  ;;  %v783_v16 = vmul.f32 %v1316_v54, %v782_v4  ;;  %v719_v19 = vmul.f32 %v1318_v6, %v710_v55  ;;  %vm725_vm4 = vweird.f32 %v1318_v6 }
 0x1fe   : > { %v789_v20 = vmul.f32 %v1320_v9, %v717_v56  ;;  %v867_v37 = vmax.f32 %v851_v7, 0.0  ;;  %v868_v38 = vmax.f32 %v852_v8, 0.0  ;;  %vm795_vm5 = vweird.f32 %v1320_v9  ;;  %vm726_vm7 = vmor %vm724_vm6, %vm725_vm4 }
 0x1ff   : > { %v720_v17 = vmul.f32 %v1318_v6, %v719_v19  ;;  %v787_v18 = vsel %vm786_vm3, %v1316_v54, %v783_v16  ;;  %vm796_vm9 = vmor %vm794_vm8, %vm795_vm5 }
 0x200   : > { %v790_v58 = vmul.f32 %v1320_v9, %v789_v20  ;;  %940 = vmatmul.f32.gmra.mxu2 %v867_v37  ;;  %v815_v59 = vmul.f32 %v1774_v14, %v787_v18  ;;  %v816_v21 = vmul.f32 %v1776_v22, %v787_v18  ;;  %981 = vmatmul.f32.gmra.mxu3 %v868_v38 }
 0x201   : > { %v721_v23 = vmul.f32 0.5, %v720_v17 }
 0x202   : > { %v791_v13 = vmul.f32 0.5, %v790_v58  ;;  %v831_v24 = vmul.f32 %v815_v59, %v1694_v1  ;;  %v832_v25 = vmul.f32 %v816_v21, %v1697_v2 }
 0x203   : > { %v722_v26 = vsub.f32 1.5, %v721_v23 }
 0x204   : > { %v792_v28 = vsub.f32 1.5, %v791_v13  ;;  %v853_v29 = vadd.f32 %v1782_v32, %v831_v24  ;;  %v854_v33 = vadd.f32 %v1785_v34, %v832_v25 }
 0x205   : > { %v723_v35 = vmul.f32 %v1318_v6, %v722_v26 }
 0x206   : > { %v793_v36 = vmul.f32 %v1320_v9, %v792_v28  ;;  %v869_v39 = vmax.f32 %v853_v29, 0.0  ;;  %v870_v40 = vmax.f32 %v854_v33, 0.0 }
 0x207   : > { %v727_v41 = vsel %vm726_vm7, %v1318_v6, %v723_v35 }
 0x208   : > { %943 = vmatmul.f32.gmra.mxu2 %v869_v39  ;;  %v803_v1 = vmul.f32 %v1774_v14, %v727_v41  ;;  %v797_v2 = vsel %vm796_vm9, %v1320_v9, %v793_v36  ;;  %v804_v44 = vmul.f32 %v1776_v22, %v727_v41  ;;  %984 = vmatmul.f32.gmra.mxu3 %v870_v40 }
 0x209   : > { %v817_v45 = vmul.f32 %v1774_v14, %v797_v2  ;;  %v818_v42 = vmul.f32 %v1776_v22, %v797_v2 }
 0x20a   : > { %v819_v43 = vmul.f32 %v803_v1, %v1712_v12  ;;  %v820_v47 = vmul.f32 %v804_v44, %v1715_v15 }
 0x20b   : > { %v833_v48 = vmul.f32 %v817_v45, %v1706_v10  ;;  %v834_v46 = vmul.f32 %v818_v42, %v1709_v11  ;;  %v1302_v10 = vld [vmem:[%s481_s13] ss:$0 sm:$0xff]  ;;  %s1193_s13 = sshll.u32 (%p1502_p9), %s1008_s22, 3 }
 0x20c   : > { %v841_v49 = vadd.f32 %v1782_v32, %v819_v43  ;;  %v842_v50 = vadd.f32 %v1785_v34, %v820_v47  ;;  %s1010_s19 = scalar_lea.vmem (%p1502_p9), %s1903_s7, %s1193_s13 }
 0x20d   : > { %v855_v53 = vadd.f32 %v1782_v32, %v833_v48  ;;  %v856_v14 = vadd.f32 %v1785_v34, %v834_v46 }
 0x20e   : > { %v857_v54 = vmax.f32 %v841_v49, 0.0  ;;  %v858_v22 = vmax.f32 %v842_v50, 0.0 }
 0x20f   : > { %v871_v55 = vmax.f32 %v855_v53, 0.0  ;;  %v872_v12 = vmax.f32 %v856_v14, 0.0 }
 0x210   : > { %925 = vmatmul.f32.vlgmr.msrb.gmra.mxu0 %v857_v54  ;;  %966 = vmatmul.f32.vlgmr.msrb.gmra.mxu1 %v858_v22 }
 0x211   : > { %946 = vmatmul.f32.gmra.mxu2 %v871_v55  ;;  %987 = vmatmul.f32.gmra.mxu3 %v872_v12 }
 0x263   : > { %v929_v11 = vpop.f32.mrf.mxu2  ;;  %v970_v15 = vpop.f32.mrf.mxu3 }
 0x264   : > { %v930_v32 = vadd.f32 %v1302_v10, %v929_v11 }
 0x266   : > { %v971_v56 = vadd.f32 %v970_v15, %v930_v32 }
 0x268   : > { %992 = vst [vmem:[%s1844_s26 + $0x8] sm:$0xff] %v971_v56 }
 0x26b   : > { %v932_v34 = vpop.f32.mrf.mxu2  ;;  %v973_v30 = vpop.f32.mrf.mxu3 }
 0x26c   : > { %v933_v31 = vadd.f32 %v1302_v10, %v932_v34 }
 0x26e   : > { %v974_v57 = vadd.f32 %v973_v30, %v933_v31 }
 0x26f   : > { %v1055_v23 = vld [vmem:[%s1844_s26 + $0x8] sm:$0xff] (%p1502_p9) }
 0x270   : > { %993 = vst [vmem:[%s1844_s26 + $0x10] sm:$0xff] %v974_v57 }
 0x271   : > { %1056 = vst [vmem:[%s1010_s19 + $0x10] sm:$0xff] (%p1502_p9), %v1055_v23 }
 0x273   : > { %v935_v60 = vpop.f32.mrf.mxu2  ;;  %v976_v61 = vpop.f32.mrf.mxu3 }
 0x274   : > { %v936_v27 = vadd.f32 %v1302_v10, %v935_v60 }
 0x276   : > { %v977_v51 = vadd.f32 %v976_v61, %v936_v27 }
 0x277   : > { %v1057_v13 = vld [vmem:[%s1844_s26 + $0x10] sm:$0xff] (%p1502_p9) }
 0x278   : > { %994 = vst [vmem:[%s1844_s26 + $0x18] sm:$0xff] %v977_v51 }
 0x279   : > { %1058 = vst [vmem:[%s1010_s19 + $0x20] sm:$0xff] (%p1502_p9), %v1057_v13 }
 0x27b   : > { %v938_v62 = vpop.f32.mrf.mxu2  ;;  %v979_v63 = vpop.f32.mrf.mxu3 }
 0x27c   : > { %v939_v52 = vadd.f32 %v1302_v10, %v938_v62 }
 0x27e   : > { %v980_v0 = vadd.f32 %v979_v63, %v939_v52 }
 0x27f   : > { %v1059_v24 = vld [vmem:[%s1844_s26 + $0x18] sm:$0xff] (%p1502_p9) }
 0x280   : > { %995 = vst [vmem:[%s1844_s26 + $0x20] sm:$0xff] %v980_v0 }
 0x281   : > { %1060 = vst [vmem:[%s1010_s19 + $0x30] sm:$0xff] (%p1502_p9), %v1059_v24 }
 0x283   : > { %v941_v3 = vpop.f32.mrf.mxu2  ;;  %v982_v4 = vpop.f32.mrf.mxu3 }
 0x284   : > { %v942_v5 = vadd.f32 %v1302_v10, %v941_v3 }
 0x286   : > { %v983_v6 = vadd.f32 %v982_v4, %v942_v5 }
 0x287   : > { %v1061_v25 = vld [vmem:[%s1844_s26 + $0x20] sm:$0xff] (%p1502_p9) }
 0x288   : > { %996 = vst [vmem:[%s1844_s26 + $0x28] sm:$0xff] %v983_v6 }
 0x289   : > { %1062 = vst [vmem:[%s1010_s19 + $0x40] sm:$0xff] (%p1502_p9), %v1061_v25 }
 0x28b   : > { %v944_v7 = vpop.f32.mrf.mxu2  ;;  %v985_v9 = vpop.f32.mrf.mxu3 }
 0x28c   : > { %v945_v8 = vadd.f32 %v1302_v10, %v944_v7 }
 0x28d   : > { %v926_v16 = vpop.f32.mrf.mxu0  ;;  %v967_v37 = vpop.f32.mrf.mxu1 }
 0x28e   : > { %v986_v19 = vadd.f32 %v985_v9, %v945_v8  ;;  %v927_v20 = vadd.f32 %v1302_v10, %v926_v16 }
 0x28f   : > { %v1063_v26 = vld [vmem:[%s1844_s26 + $0x28] sm:$0xff] (%p1502_p9) }
 0x290   : > { %997 = vst [vmem:[%s1844_s26 + $0x30] sm:$0xff] %v986_v19  ;;  %v968_v38 = vadd.f32 %v967_v37, %v927_v20 }
 0x291   : > { %1064 = vst [vmem:[%s1010_s19 + $0x50] sm:$0xff] (%p1502_p9), %v1063_v26 }
 0x292   : > { %991 = vst [vmem:[%s1844_s26] sm:$0xff] %v968_v38 }
 0x294   : > { %v947_v17 = vpop.f32.mrf.mxu2  ;;  %v988_v58 = vpop.f32.mrf.mxu3 }
 0x295   : > { %v948_v18 = vadd.f32 %v1302_v10, %v947_v17  ;;  %1005 = sbr.rel (!%p1502_p9) target bundleno = 674 (0x2a2), region = 90 }
 0x297   : > { %v989_v59 = vadd.f32 %v988_v58, %v948_v18  ;;  %v1065_v28 = vld [vmem:[%s1844_s26 + $0x30] sm:$0xff] (%p1502_p9) }
 0x298   : > { %1066 = vst [vmem:[%s1010_s19 + $0x60] sm:$0xff] (%p1502_p9), %v1065_v28 }
 0x299   : > { %998 = vst [vmem:[%s1844_s26 + $0x38] sm:$0xff] %v989_v59  ;;  %v1053_v21 = vld [vmem:[%s1844_s26] sm:$0xff] (%p1502_p9) }
 0x29a   : > { %1054 = vst [vmem:[%s1010_s19] sm:$0xff] %v1053_v21 }
 0x2a0   : > { %v1067_v29 = vld [vmem:[%s1844_s26 + $0x38] sm:$0xff] }
 0x2a1   : > { %1068 = vst [vmem:[%s1010_s19 + $0x70] sm:$0xff] %v1067_v29 }
 0x2a2 PF: > { %s17_s9 = sadd.s32 1, %s1391_s9   ;;  %s1906_s24 = smov %s1363_s25 }
 0x2a3   : > { %p14_p2 = scmp.ge.s32.totalorder %s17_s9, 8   ;;  %s1907_s25 = smov %s1510_s21 }
 0x2a4   : > { %s1908_s26 = smov %s1371_s27  ;;  %s1909_s27 = smov %s1507_s20 }
 0x2a5   : > { %s1910_s28 = smov %s1383_s30  ;;  %s1911_s29 = smov %s1387_s8 }
 0x2a6   : > { %s1912_s30 = smov %s1915_s10  ;;  %s1913_s8 = smov %s1919_s11 }
 0x2a7   :  { %16 = sbr.rel (!%p14_p2) target bundleno = 5 (0x5), region = 165 }

</bundles_post_ra>
